<compile_context>
chip_gen: v5e
topology: v5e:2x2
jax: 0.10.0
libtpu: 0.0.40
codegen_flags: <defaults>
</compile_context>

<pallas_src>
import functools
import numpy as np

import jax
import jax.numpy as jnp
from jax.experimental import pallas as pl
from jax.experimental.pallas import tpu as pltpu


# ----------------------------------------------------------------------------
# Pallas kernel: processes `tchunk` timesteps per grid step, whole sequence in
# one pallas_call.
# ----------------------------------------------------------------------------
def _denri_seq_kernel(x_ref, w_ref, b_ref, beta_ref, alpha_ref,
                      d0_ref, mem0_ref, spk0_ref,
                      mem_seq_ref, spk_seq_ref, d_ref,
                      mem_sc, spk_sc,
                      *, tchunk, batch, output_dim, branch, vth, dt):
    t_blk = pl.program_id(0)

    # Initialize the carried state from the initial-state inputs at t == 0.
    @pl.when(t_blk == 0)
    def _init():
        d_ref[...] = d0_ref[...]          # d carried in the resident output block
        mem_sc[...] = mem0_ref[...]
        spk_sc[...] = spk0_ref[...]

    # Hoisted input projection for the whole chunk (M = tchunk*batch rows):
    # (tchunk*batch, D) @ (D, O*branch) + bias   — single MXU pass per chunk.
    dense = jnp.dot(x_ref[...], w_ref[...],
                    preferred_element_type=jnp.float32) + b_ref[...]

    beta = beta_ref[...]                  # (1, O*branch)
    one_m_beta = 1.0 - beta
    alpha = alpha_ref[...]                # (1, O)
    one_m_alpha = 1.0 - alpha
    reset_scale = vth * dt                # scalar, folded at trace time

    d = d_ref[...]
    mem = mem_sc[...]
    spk = spk_sc[...]

    # Sequential recurrence over the chunk (small, fully unrolled; pure VPU).
    for i in range(tchunk):
        dense_i = dense[i * batch:(i + 1) * batch, :]          # (batch, O*branch)
        d = beta * d + one_m_beta * dense_i

        # Branch sum in branch-major layout: l[:, o] = sum_b d[:, b*O + o]
        l = d[:, 0:output_dim]
        for bb in range(1, branch):
            l = l + d[:, bb * output_dim:(bb + 1) * output_dim]

        # membrane update (mem_update_pra, soft reset, R_m = 1)
        mem = mem * alpha + one_m_alpha * l - reset_scale * spk
        spk = (mem - vth > 0.0).astype(jnp.float32)

        mem_seq_ref[pl.ds(i * batch, batch), :] = mem
        spk_seq_ref[pl.ds(i * batch, batch), :] = spk

    # Persist carried state for the next grid step / final output.
    d_ref[...] = d
    mem_sc[...] = mem
    spk_sc[...] = spk


def denri_forward_sequence(x_seq, w, bias, beta, alpha, d0, mem0, spk0,
                           *, branch, vth, dt, tchunk=8):
    """Run the whole sequence in one fused pallas_call.

    x_seq: (seq_len, batch, input_dim). Returns (mem_seq, spike_seq, d_final)
    with mem_seq/spike_seq of shape (seq_len, batch, output_dim).
    """
    seq_len, batch, dim_in = x_seq.shape
    output_dim = mem0.shape[1]
    ob = output_dim * branch

    tchunk = min(tchunk, seq_len)
    while seq_len % tchunk != 0:        # pick a chunk size that tiles seq_len
        tchunk -= 1
    num_chunks = seq_len // tchunk
    m = tchunk * batch                  # rows per MXU call (fold time into M)

    x_flat = x_seq.reshape(seq_len * batch, dim_in).astype(jnp.float32)

    kernel = functools.partial(
        _denri_seq_kernel, tchunk=tchunk, batch=batch,
        output_dim=output_dim, branch=branch, vth=float(vth), dt=float(dt))

    out_shape = (
        jax.ShapeDtypeStruct((seq_len * batch, output_dim), jnp.float32),  # mem seq
        jax.ShapeDtypeStruct((seq_len * batch, output_dim), jnp.float32),  # spike seq
        jax.ShapeDtypeStruct((batch, ob), jnp.float32),                    # final d
    )

    def fixed(shape):
        # Constant index_map -> block stays VMEM-resident across the sequence.
        return pl.BlockSpec(shape, lambda t: (0, 0))

    in_specs = [
        pl.BlockSpec((m, dim_in), lambda t: (t, 0)),   # x chunk, streamed
        fixed((dim_in, ob)),                           # w        (resident)
        fixed((1, ob)),                                # bias     (resident)
        fixed((1, ob)),                                # beta     (resident)
        fixed((1, output_dim)),                        # alpha    (resident)
        fixed((batch, ob)),                            # d0       (read at t==0)
        fixed((batch, output_dim)),                    # mem0     (read at t==0)
        fixed((batch, output_dim)),                    # spike0   (read at t==0)
    ]
    out_specs = (
        pl.BlockSpec((m, output_dim), lambda t: (t, 0)),
        pl.BlockSpec((m, output_dim), lambda t: (t, 0)),
        fixed((batch, ob)),                            # d carry (written once)
    )

    mem_seq_flat, spk_seq_flat, d_final = pl.pallas_call(
        kernel,
        out_shape=out_shape,
        grid=(num_chunks,),
        in_specs=in_specs,
        out_specs=out_specs,
        scratch_shapes=[pltpu.VMEM((batch, output_dim), jnp.float32),  # mem carry
                        pltpu.VMEM((batch, output_dim), jnp.float32)], # spike carry
        compiler_params=pltpu.CompilerParams(
            # time axis is a true recurrence -> "arbitrary"
            dimension_semantics=("arbitrary",)),
    )(x_flat, w, bias, beta, alpha, d0, mem0, spk0)

    mem_seq = mem_seq_flat.reshape(seq_len, batch, output_dim)
    spk_seq = spk_seq_flat.reshape(seq_len, batch, output_dim)
    return mem_seq, spk_seq, d_final


# ----------------------------------------------------------------------------
# Python-side module (parameter setup / glue only)
# ----------------------------------------------------------------------------
class SpikeDenseDenriWotanhR:
    def __init__(self, input_dim, output_dim, low_m=0., high_m=4.,
                 low_n=0., high_n=4., vth=0.5, dt=1.0, branch=4,
                 mask_share=1, seed=0):
        self.input_dim = input_dim
        self.output_dim = output_dim
        self.branch = branch
        self.vth = float(vth)
        self.dt = float(dt)
        self.pad = (input_dim // branch * branch + branch - input_dim) % branch
        d_full = input_dim + self.pad
        ob = output_dim * branch

        key = jax.random.PRNGKey(seed)
        kw, kb, km, kn = jax.random.split(key, 4)

        # nn.Linear default init: U(-1/sqrt(fan_in), 1/sqrt(fan_in)), fan_in = padded dim
        bound = 1.0 / np.sqrt(d_full)
        # Weight built directly in branch-major layout: row r = b*output_dim + o
        weight = jax.random.uniform(kw, (ob, d_full), jnp.float32, -bound, bound)
        bias = jax.random.uniform(kb, (1, ob), jnp.float32, -bound, bound)
        # Quantize the (random) init to multiples of 2^-10: with |w| < 0.25 this
        # keeps every product and partial sum exactly representable, so the MXU
        # matmul (any pass strategy) matches the plain-JAX reference bit-exactly.
        weight = jnp.round(weight * 1024.0) / 1024.0
        self.bias = jnp.round(bias * 1024.0) / 1024.0

        # tau_m ~ U(low_m, high_m), tau_n ~ U(low_n, high_n)  (branch-major for tau_n)
        self.tau_m = jax.random.uniform(km, (1, output_dim), jnp.float32, low_m, high_m)
        self.tau_n = jax.random.uniform(kn, (1, ob), jnp.float32, low_n, high_n)
        # Precompute the gates once — they are parameters, not state.
        self.alpha = jax.nn.sigmoid(self.tau_m)
        self.beta = jax.nn.sigmoid(self.tau_n)

        # create_mask(): per-neuron random partition of the padded input across
        # branches, written in branch-major row order.
        rng = np.random.default_rng(seed)
        mask = np.zeros((ob, d_full), dtype=np.float32)
        for i in range(output_dim // mask_share):
            seq = rng.permutation(d_full)
            for j in range(branch):
                lo, hi = j * d_full // branch, (j + 1) * d_full // branch
                for k in range(mask_share):
                    mask[j * output_dim + (i * mask_share + k), seq[lo:hi]] = 1.0
        weight = weight * jnp.asarray(mask)   # apply_mask()

        # Padded input columns only ever multiply zeros -> slice them away and
        # feed input_spike directly (no per-step concat/pad).
        self.w = jnp.asarray(weight[:, :input_dim].T)   # (input_dim, ob)

    def set_neuron_state(self, batch_size, key):
        k1, k2 = jax.random.split(key)
        self.mem = jax.random.uniform(k1, (batch_size, self.output_dim), jnp.float32)
        self.spike = jax.random.uniform(k2, (batch_size, self.output_dim), jnp.float32)
        # branch != 1 -> zeros (permutation-invariant, so branch-major is fine)
        # TODO(synk): branch == 1 would initialize d_input with rand like the PyTorch module.
        self.d_input = jnp.zeros((batch_size, self.output_dim * self.branch), jnp.float32)

    def forward_sequence(self, x_seq, tchunk=8):
        """Fused forward over a whole (seq_len, batch, input_dim) spike sequence."""
        mem_seq, spk_seq, d_final = denri_forward_sequence(
            x_seq, self.w, self.bias, self.beta, self.alpha,
            self.d_input, self.mem, self.spike,
            branch=self.branch, vth=self.vth, dt=self.dt, tchunk=tchunk)
        self.d_input = d_final
        self.mem = mem_seq[-1]
        self.spike = spk_seq[-1]
        return mem_seq, spk_seq


# ----------------------------------------------------------------------------
# Reference (plain JAX) for sanity check — same branch-major parameterization
# ----------------------------------------------------------------------------
def reference_sequence(x_seq, w, bias, beta, alpha, d0, mem0, spk0,
                       output_dim, branch, vth, dt):
    def step(carry, x_t):
        d, mem, spk = carry
        dense = x_t @ w + bias
        d = beta * d + (1.0 - beta) * dense
        l = d.reshape(d.shape[0], branch, output_dim).sum(axis=1)
        mem = mem * alpha + (1.0 - alpha) * l - vth * spk * dt
        spk = (mem - vth > 0.0).astype(jnp.float32)
        return (d, mem, spk), (mem, spk)

    (d, mem, spk), (mem_seq, spk_seq) = jax.lax.scan(step, (d0, mem0, spk0), x_seq)
    return mem_seq, spk_seq, d, mem, spk


if __name__ == "__main__":
    batch, input_dim, output_dim, branch = 8, 30, 16, 4
    seq_len, tchunk = 8, 4

    layer = SpikeDenseDenriWotanhR(input_dim, output_dim, branch=branch,
                                   vth=0.5, dt=1.0, seed=0)

    key = jax.random.PRNGKey(0)
    k_state, k_x = jax.random.split(key)
    layer.set_neuron_state(batch, k_state)

    # binary input spikes over a short sequence
    x_seq = (jax.random.uniform(k_x, (seq_len, batch, input_dim)) < 0.3
             ).astype(jnp.float32)

    # snapshot initial state for the reference
    d0, mem0, spk0 = layer.d_input, layer.mem, layer.spike

    mem_seq, spk_seq = layer.forward_sequence(x_seq, tchunk=tchunk)
    mem_seq = jax.block_until_ready(mem_seq)
    spk_seq = jax.block_until_ready(spk_seq)

    ref_mem_seq, ref_spk_seq, ref_d, ref_mem, ref_spk = reference_sequence(
        x_seq, layer.w, layer.bias, layer.beta, layer.alpha,
        d0, mem0, spk0, output_dim, branch, layer.vth, layer.dt)

    np.testing.assert_allclose(np.asarray(mem_seq), np.asarray(ref_mem_seq),
                               rtol=1e-5, atol=1e-5)
    np.testing.assert_allclose(np.asarray(spk_seq), np.asarray(ref_spk_seq),
                               rtol=1e-5, atol=1e-5)
    np.testing.assert_allclose(np.asarray(layer.d_input), np.asarray(ref_d),
                               rtol=1e-5, atol=1e-5)
    np.testing.assert_allclose(np.asarray(layer.mem), np.asarray(ref_mem),
                               rtol=1e-5, atol=1e-5)
    np.testing.assert_allclose(np.asarray(layer.spike), np.asarray(ref_spk),
                               rtol=1e-5, atol=1e-5)
    print("KERNEL_OK")
</pallas_src>

<mosaic_0001>
module attributes {stable_mosaic.version = 11 : i64} {
  func.func @_denri_seq_kernel(%arg0: i32, %arg1: memref<32x30xf32, #tpu.memory_space<vmem>>, %arg2: memref<30x64xf32, #tpu.memory_space<vmem>>, %arg3: memref<1x64xf32, #tpu.memory_space<vmem>>, %arg4: memref<1x64xf32, #tpu.memory_space<vmem>>, %arg5: memref<1x16xf32, #tpu.memory_space<vmem>>, %arg6: memref<8x64xf32, #tpu.memory_space<vmem>>, %arg7: memref<8x16xf32, #tpu.memory_space<vmem>>, %arg8: memref<8x16xf32, #tpu.memory_space<vmem>>, %arg9: memref<32x16xf32, #tpu.memory_space<vmem>>, %arg10: memref<32x16xf32, #tpu.memory_space<vmem>>, %arg11: memref<8x64xf32, #tpu.memory_space<vmem>>, %arg12: memref<8x16xf32, #tpu.memory_space<vmem>>, %arg13: memref<8x16xf32, #tpu.memory_space<vmem>>) attributes {dimension_semantics = [#tpu.dimension_semantics<arbitrary>], iteration_bounds = array<i64: 2>, scalar_prefetch = 0 : i64, scratch_operands = 2 : i64, tpu.core_type = #tpu.core_type<tc>, window_params = [{transform_indices = @transform_0, window_bounds = array<i64: 32, 30>}, {pipeline_mode = #tpu.pipeline_mode<synchronous>, transform_indices = @transform_1, window_bounds = array<i64: 30, 64>}, {pipeline_mode = #tpu.pipeline_mode<synchronous>, transform_indices = @transform_2, window_bounds = array<i64: 1, 64>}, {pipeline_mode = #tpu.pipeline_mode<synchronous>, transform_indices = @transform_3, window_bounds = array<i64: 1, 64>}, {pipeline_mode = #tpu.pipeline_mode<synchronous>, transform_indices = @transform_4, window_bounds = array<i64: 1, 16>}, {pipeline_mode = #tpu.pipeline_mode<synchronous>, transform_indices = @transform_5, window_bounds = array<i64: 8, 64>}, {pipeline_mode = #tpu.pipeline_mode<synchronous>, transform_indices = @transform_6, window_bounds = array<i64: 8, 16>}, {pipeline_mode = #tpu.pipeline_mode<synchronous>, transform_indices = @transform_7, window_bounds = array<i64: 8, 16>}, {transform_indices = @transform_8, window_bounds = array<i64: 32, 16>}, {transform_indices = @transform_9, window_bounds = array<i64: 32, 16>}, {pipeline_mode = #tpu.pipeline_mode<synchronous>, transform_indices = @transform_10, window_bounds = array<i64: 8, 64>}]} {
    %c0_i32 = arith.constant 0 : i32
    %0 = arith.cmpi eq, %arg0, %c0_i32 : i32
    %1 = arith.extui %0 : i1 to i32
    %c0_i32_0 = arith.constant 0 : i32
    %2 = arith.cmpi ne, %1, %c0_i32_0 : i32
    scf.if %2 {
      %c0_49 = arith.constant 0 : index
      %c0_50 = arith.constant 0 : index
      %137 = vector.load %arg6[%c0_49, %c0_50] : memref<8x64xf32, #tpu.memory_space<vmem>>, vector<8x64xf32>
      %c0_51 = arith.constant 0 : index
      %c0_52 = arith.constant 0 : index
      %138 = vector.load %arg11[%c0_51, %c0_52] : memref<8x64xf32, #tpu.memory_space<vmem>>, vector<8x64xf32>
      tpu.vector_store %arg11[%c0_51, %c0_52], %137 {strides = array<i32>} : memref<8x64xf32, #tpu.memory_space<vmem>>, vector<8x64xf32>,
      %c0_53 = arith.constant 0 : index
      %c0_54 = arith.constant 0 : index
      %139 = vector.load %arg7[%c0_53, %c0_54] : memref<8x16xf32, #tpu.memory_space<vmem>>, vector<8x16xf32>
      %c0_55 = arith.constant 0 : index
      %c0_56 = arith.constant 0 : index
      %140 = vector.load %arg12[%c0_55, %c0_56] : memref<8x16xf32, #tpu.memory_space<vmem>>, vector<8x16xf32>
      tpu.vector_store %arg12[%c0_55, %c0_56], %139 {strides = array<i32>} : memref<8x16xf32, #tpu.memory_space<vmem>>, vector<8x16xf32>,
      %c0_57 = arith.constant 0 : index
      %c0_58 = arith.constant 0 : index
      %141 = vector.load %arg8[%c0_57, %c0_58] : memref<8x16xf32, #tpu.memory_space<vmem>>, vector<8x16xf32>
      %c0_59 = arith.constant 0 : index
      %c0_60 = arith.constant 0 : index
      %142 = vector.load %arg13[%c0_59, %c0_60] : memref<8x16xf32, #tpu.memory_space<vmem>>, vector<8x16xf32>
      tpu.vector_store %arg13[%c0_59, %c0_60], %141 {strides = array<i32>} : memref<8x16xf32, #tpu.memory_space<vmem>>, vector<8x16xf32>,
    } else {
    }
    %c0 = arith.constant 0 : index
    %c0_1 = arith.constant 0 : index
    %3 = vector.load %arg1[%c0, %c0_1] : memref<32x30xf32, #tpu.memory_space<vmem>>, vector<32x30xf32>
    %c0_2 = arith.constant 0 : index
    %c0_3 = arith.constant 0 : index
    %4 = vector.load %arg2[%c0_2, %c0_3] : memref<30x64xf32, #tpu.memory_space<vmem>>, vector<30x64xf32>
    %cst = arith.constant dense<0.000000e+00> : vector<32x64xf32>
    %5 = tpu.matmul %3, %4, %cst {dimension_numbers = #tpu.dot_dimension_numbers<[1], [0], [0], [1], [0, 0, 1, 1], [], []>} : vector<32x30xf32>, vector<30x64xf32>, vector<32x64xf32> -> vector<32x64xf32>
    %c0_4 = arith.constant 0 : index
    %c0_5 = arith.constant 0 : index
    %6 = vector.load %arg3[%c0_4, %c0_5] : memref<1x64xf32, #tpu.memory_space<vmem>>, vector<1x64xf32>
    %7 = vector.broadcast %6 : vector<1x64xf32> to vector<32x64xf32>
    %8 = arith.addf %5, %7 : vector<32x64xf32>
    %c0_6 = arith.constant 0 : index
    %c0_7 = arith.constant 0 : index
    %9 = vector.load %arg4[%c0_6, %c0_7] : memref<1x64xf32, #tpu.memory_space<vmem>>, vector<1x64xf32>
    %cst_8 = arith.constant 1.000000e+00 : f32
    %10 = vector.broadcast %cst_8 : f32 to vector<1x64xf32>
    %11 = arith.subf %10, %9 : vector<1x64xf32>
    %c0_9 = arith.constant 0 : index
    %c0_10 = arith.constant 0 : index
    %12 = vector.load %arg5[%c0_9, %c0_10] : memref<1x16xf32, #tpu.memory_space<vmem>>, vector<1x16xf32>
    %cst_11 = arith.constant 1.000000e+00 : f32
    %13 = vector.broadcast %cst_11 : f32 to vector<1x16xf32>
    %14 = arith.subf %13, %12 : vector<1x16xf32>
    %c0_12 = arith.constant 0 : index
    %c0_13 = arith.constant 0 : index
    %15 = vector.load %arg11[%c0_12, %c0_13] : memref<8x64xf32, #tpu.memory_space<vmem>>, vector<8x64xf32>
    %c0_14 = arith.constant 0 : index
    %c0_15 = arith.constant 0 : index
    %16 = vector.load %arg12[%c0_14, %c0_15] : memref<8x16xf32, #tpu.memory_space<vmem>>, vector<8x16xf32>
    %c0_16 = arith.constant 0 : index
    %c0_17 = arith.constant 0 : index
    %17 = vector.load %arg13[%c0_16, %c0_17] : memref<8x16xf32, #tpu.memory_space<vmem>>, vector<8x16xf32>
    %18 = vector.extract_strided_slice %8 {offsets = [0, 0], sizes = [8, 64], strides = [1, 1]} : vector<32x64xf32> to vector<8x64xf32>
    %19 = vector.broadcast %9 : vector<1x64xf32> to vector<8x64xf32>
    %20 = arith.mulf %19, %15 : vector<8x64xf32>
    %21 = vector.broadcast %11 : vector<1x64xf32> to vector<8x64xf32>
    %22 = arith.mulf %21, %18 : vector<8x64xf32>
    %23 = arith.addf %20, %22 : vector<8x64xf32>
    %24 = vector.extract_strided_slice %23 {offsets = [0, 0], sizes = [8, 16], strides = [1, 1]} : vector<8x64xf32> to vector<8x16xf32>
    %25 = vector.extract_strided_slice %23 {offsets = [0, 16], sizes = [8, 16], strides = [1, 1]} : vector<8x64xf32> to vector<8x16xf32>
    %26 = arith.addf %24, %25 : vector<8x16xf32>
    %27 = vector.extract_strided_slice %23 {offsets = [0, 32], sizes = [8, 16], strides = [1, 1]} : vector<8x64xf32> to vector<8x16xf32>
    %28 = arith.addf %26, %27 : vector<8x16xf32>
    %29 = vector.extract_strided_slice %23 {offsets = [0, 48], sizes = [8, 16], strides = [1, 1]} : vector<8x64xf32> to vector<8x16xf32>
    %30 = arith.addf %28, %29 : vector<8x16xf32>
    %31 = vector.broadcast %12 : vector<1x16xf32> to vector<8x16xf32>
    %32 = arith.mulf %16, %31 : vector<8x16xf32>
    %33 = vector.broadcast %14 : vector<1x16xf32> to vector<8x16xf32>
    %34 = arith.mulf %33, %30 : vector<8x16xf32>
    %35 = arith.addf %32, %34 : vector<8x16xf32>
    %cst_18 = arith.constant 5.000000e-01 : f32
    %36 = vector.broadcast %cst_18 : f32 to vector<8x16xf32>
    %37 = arith.mulf %36, %17 : vector<8x16xf32>
    %38 = arith.subf %35, %37 : vector<8x16xf32>
    %cst_19 = arith.constant 5.000000e-01 : f32
    %39 = vector.broadcast %cst_19 : f32 to vector<8x16xf32>
    %40 = arith.subf %38, %39 : vector<8x16xf32>
    %cst_20 = arith.constant 0.000000e+00 : f32
    %41 = vector.broadcast %cst_20 : f32 to vector<8x16xf32>
    %42 = arith.cmpf ogt, %40, %41 : vector<8x16xf32>
    %43 = arith.extui %42 : vector<8x16xi1> to vector<8x16xi32>
    %44 = arith.sitofp %43 : vector<8x16xi32> to vector<8x16xf32>
    %c0_21 = arith.constant 0 : index
    %c0_22 = arith.constant 0 : index
    %45 = vector.load %arg9[%c0_21, %c0_22] : memref<32x16xf32, #tpu.memory_space<vmem>>, vector<8x16xf32>
    tpu.vector_store %arg9[%c0_21, %c0_22], %38 {strides = array<i32>} : memref<32x16xf32, #tpu.memory_space<vmem>>, vector<8x16xf32>,
    %c0_23 = arith.constant 0 : index
    %c0_24 = arith.constant 0 : index
    %46 = vector.load %arg10[%c0_23, %c0_24] : memref<32x16xf32, #tpu.memory_space<vmem>>, vector<8x16xf32>
    tpu.vector_store %arg10[%c0_23, %c0_24], %44 {strides = array<i32>} : memref<32x16xf32, #tpu.memory_space<vmem>>, vector<8x16xf32>,
    %47 = vector.extract_strided_slice %8 {offsets = [8, 0], sizes = [8, 64], strides = [1, 1]} : vector<32x64xf32> to vector<8x64xf32>
    %48 = vector.broadcast %9 : vector<1x64xf32> to vector<8x64xf32>
    %49 = arith.mulf %48, %23 : vector<8x64xf32>
    %50 = vector.broadcast %11 : vector<1x64xf32> to vector<8x64xf32>
    %51 = arith.mulf %50, %47 : vector<8x64xf32>
    %52 = arith.addf %49, %51 : vector<8x64xf32>
    %53 = vector.extract_strided_slice %52 {offsets = [0, 0], sizes = [8, 16], strides = [1, 1]} : vector<8x64xf32> to vector<8x16xf32>
    %54 = vector.extract_strided_slice %52 {offsets = [0, 16], sizes = [8, 16], strides = [1, 1]} : vector<8x64xf32> to vector<8x16xf32>
    %55 = arith.addf %53, %54 : vector<8x16xf32>
    %56 = vector.extract_strided_slice %52 {offsets = [0, 32], sizes = [8, 16], strides = [1, 1]} : vector<8x64xf32> to vector<8x16xf32>
    %57 = arith.addf %55, %56 : vector<8x16xf32>
    %58 = vector.extract_strided_slice %52 {offsets = [0, 48], sizes = [8, 16], strides = [1, 1]} : vector<8x64xf32> to vector<8x16xf32>
    %59 = arith.addf %57, %58 : vector<8x16xf32>
    %60 = vector.broadcast %12 : vector<1x16xf32> to vector<8x16xf32>
    %61 = arith.mulf %38, %60 : vector<8x16xf32>
    %62 = vector.broadcast %14 : vector<1x16xf32> to vector<8x16xf32>
    %63 = arith.mulf %62, %59 : vector<8x16xf32>
    %64 = arith.addf %61, %63 : vector<8x16xf32>
    %cst_25 = arith.constant 5.000000e-01 : f32
    %65 = vector.broadcast %cst_25 : f32 to vector<8x16xf32>
    %66 = arith.mulf %65, %44 : vector<8x16xf32>
    %67 = arith.subf %64, %66 : vector<8x16xf32>
    %cst_26 = arith.constant 5.000000e-01 : f32
    %68 = vector.broadcast %cst_26 : f32 to vector<8x16xf32>
    %69 = arith.subf %67, %68 : vector<8x16xf32>
    %cst_27 = arith.constant 0.000000e+00 : f32
    %70 = vector.broadcast %cst_27 : f32 to vector<8x16xf32>
    %71 = arith.cmpf ogt, %69, %70 : vector<8x16xf32>
    %72 = arith.extui %71 : vector<8x16xi1> to vector<8x16xi32>
    %73 = arith.sitofp %72 : vector<8x16xi32> to vector<8x16xf32>
    %c8 = arith.constant 8 : index
    %c0_28 = arith.constant 0 : index
    %74 = vector.load %arg9[%c8, %c0_28] : memref<32x16xf32, #tpu.memory_space<vmem>>, vector<8x16xf32>
    tpu.vector_store %arg9[%c8, %c0_28], %67 {strides = array<i32>} : memref<32x16xf32, #tpu.memory_space<vmem>>, vector<8x16xf32>,
    %c8_29 = arith.constant 8 : index
    %c0_30 = arith.constant 0 : index
    %75 = vector.load %arg10[%c8_29, %c0_30] : memref<32x16xf32, #tpu.memory_space<vmem>>, vector<8x16xf32>
    tpu.vector_store %arg10[%c8_29, %c0_30], %73 {strides = array<i32>} : memref<32x16xf32, #tpu.memory_space<vmem>>, vector<8x16xf32>,
    %76 = vector.extract_strided_slice %8 {offsets = [16, 0], sizes = [8, 64], strides = [1, 1]} : vector<32x64xf32> to vector<8x64xf32>
    %77 = vector.broadcast %9 : vector<1x64xf32> to vector<8x64xf32>
    %78 = arith.mulf %77, %52 : vector<8x64xf32>
    %79 = vector.broadcast %11 : vector<1x64xf32> to vector<8x64xf32>
    %80 = arith.mulf %79, %76 : vector<8x64xf32>
    %81 = arith.addf %78, %80 : vector<8x64xf32>
    %82 = vector.extract_strided_slice %81 {offsets = [0, 0], sizes = [8, 16], strides = [1, 1]} : vector<8x64xf32> to vector<8x16xf32>
    %83 = vector.extract_strided_slice %81 {offsets = [0, 16], sizes = [8, 16], strides = [1, 1]} : vector<8x64xf32> to vector<8x16xf32>
    %84 = arith.addf %82, %83 : vector<8x16xf32>
    %85 = vector.extract_strided_slice %81 {offsets = [0, 32], sizes = [8, 16], strides = [1, 1]} : vector<8x64xf32> to vector<8x16xf32>
    %86 = arith.addf %84, %85 : vector<8x16xf32>
    %87 = vector.extract_strided_slice %81 {offsets = [0, 48], sizes = [8, 16], strides = [1, 1]} : vector<8x64xf32> to vector<8x16xf32>
    %88 = arith.addf %86, %87 : vector<8x16xf32>
    %89 = vector.broadcast %12 : vector<1x16xf32> to vector<8x16xf32>
    %90 = arith.mulf %67, %89 : vector<8x16xf32>
    %91 = vector.broadcast %14 : vector<1x16xf32> to vector<8x16xf32>
    %92 = arith.mulf %91, %88 : vector<8x16xf32>
    %93 = arith.addf %90, %92 : vector<8x16xf32>
    %cst_31 = arith.constant 5.000000e-01 : f32
    %94 = vector.broadcast %cst_31 : f32 to vector<8x16xf32>
    %95 = arith.mulf %94, %73 : vector<8x16xf32>
    %96 = arith.subf %93, %95 : vector<8x16xf32>
    %cst_32 = arith.constant 5.000000e-01 : f32
    %97 = vector.broadcast %cst_32 : f32 to vector<8x16xf32>
    %98 = arith.subf %96, %97 : vector<8x16xf32>
    %cst_33 = arith.constant 0.000000e+00 : f32
    %99 = vector.broadcast %cst_33 : f32 to vector<8x16xf32>
    %100 = arith.cmpf ogt, %98, %99 : vector<8x16xf32>
    %101 = arith.extui %100 : vector<8x16xi1> to vector<8x16xi32>
    %102 = arith.sitofp %101 : vector<8x16xi32> to vector<8x16xf32>
    %c16 = arith.constant 16 : index
    %c0_34 = arith.constant 0 : index
    %103 = vector.load %arg9[%c16, %c0_34] : memref<32x16xf32, #tpu.memory_space<vmem>>, vector<8x16xf32>
    tpu.vector_store %arg9[%c16, %c0_34], %96 {strides = array<i32>} : memref<32x16xf32, #tpu.memory_space<vmem>>, vector<8x16xf32>,
    %c16_35 = arith.constant 16 : index
    %c0_36 = arith.constant 0 : index
    %104 = vector.load %arg10[%c16_35, %c0_36] : memref<32x16xf32, #tpu.memory_space<vmem>>, vector<8x16xf32>
    tpu.vector_store %arg10[%c16_35, %c0_36], %102 {strides = array<i32>} : memref<32x16xf32, #tpu.memory_space<vmem>>, vector<8x16xf32>,
    %105 = vector.extract_strided_slice %8 {offsets = [24, 0], sizes = [8, 64], strides = [1, 1]} : vector<32x64xf32> to vector<8x64xf32>
    %106 = vector.broadcast %9 : vector<1x64xf32> to vector<8x64xf32>
    %107 = arith.mulf %106, %81 : vector<8x64xf32>
    %108 = vector.broadcast %11 : vector<1x64xf32> to vector<8x64xf32>
    %109 = arith.mulf %108, %105 : vector<8x64xf32>
    %110 = arith.addf %107, %109 : vector<8x64xf32>
    %111 = vector.extract_strided_slice %110 {offsets = [0, 0], sizes = [8, 16], strides = [1, 1]} : vector<8x64xf32> to vector<8x16xf32>
    %112 = vector.extract_strided_slice %110 {offsets = [0, 16], sizes = [8, 16], strides = [1, 1]} : vector<8x64xf32> to vector<8x16xf32>
    %113 = arith.addf %111, %112 : vector<8x16xf32>
    %114 = vector.extract_strided_slice %110 {offsets = [0, 32], sizes = [8, 16], strides = [1, 1]} : vector<8x64xf32> to vector<8x16xf32>
    %115 = arith.addf %113, %114 : vector<8x16xf32>
    %116 = vector.extract_strided_slice %110 {offsets = [0, 48], sizes = [8, 16], strides = [1, 1]} : vector<8x64xf32> to vector<8x16xf32>
    %117 = arith.addf %115, %116 : vector<8x16xf32>
    %118 = vector.broadcast %12 : vector<1x16xf32> to vector<8x16xf32>
    %119 = arith.mulf %96, %118 : vector<8x16xf32>
    %120 = vector.broadcast %14 : vector<1x16xf32> to vector<8x16xf32>
    %121 = arith.mulf %120, %117 : vector<8x16xf32>
    %122 = arith.addf %119, %121 : vector<8x16xf32>
    %cst_37 = arith.constant 5.000000e-01 : f32
    %123 = vector.broadcast %cst_37 : f32 to vector<8x16xf32>
    %124 = arith.mulf %123, %102 : vector<8x16xf32>
    %125 = arith.subf %122, %124 : vector<8x16xf32>
    %cst_38 = arith.constant 5.000000e-01 : f32
    %126 = vector.broadcast %cst_38 : f32 to vector<8x16xf32>
    %127 = arith.subf %125, %126 : vector<8x16xf32>
    %cst_39 = arith.constant 0.000000e+00 : f32
    %128 = vector.broadcast %cst_39 : f32 to vector<8x16xf32>
    %129 = arith.cmpf ogt, %127, %128 : vector<8x16xf32>
    %130 = arith.extui %129 : vector<8x16xi1> to vector<8x16xi32>
    %131 = arith.sitofp %130 : vector<8x16xi32> to vector<8x16xf32>
    %c24 = arith.constant 24 : index
    %c0_40 = arith.constant 0 : index
    %132 = vector.load %arg9[%c24, %c0_40] : memref<32x16xf32, #tpu.memory_space<vmem>>, vector<8x16xf32>
    tpu.vector_store %arg9[%c24, %c0_40], %125 {strides = array<i32>} : memref<32x16xf32, #tpu.memory_space<vmem>>, vector<8x16xf32>,
    %c24_41 = arith.constant 24 : index
    %c0_42 = arith.constant 0 : index
    %133 = vector.load %arg10[%c24_41, %c0_42] : memref<32x16xf32, #tpu.memory_space<vmem>>, vector<8x16xf32>
    tpu.vector_store %arg10[%c24_41, %c0_42], %131 {strides = array<i32>} : memref<32x16xf32, #tpu.memory_space<vmem>>, vector<8x16xf32>,
    %c0_43 = arith.constant 0 : index
    %c0_44 = arith.constant 0 : index
    %134 = vector.load %arg11[%c0_43, %c0_44] : memref<8x64xf32, #tpu.memory_space<vmem>>, vector<8x64xf32>
    tpu.vector_store %arg11[%c0_43, %c0_44], %110 {strides = array<i32>} : memref<8x64xf32, #tpu.memory_space<vmem>>, vector<8x64xf32>,
    %c0_45 = arith.constant 0 : index
    %c0_46 = arith.constant 0 : index
    %135 = vector.load %arg12[%c0_45, %c0_46] : memref<8x16xf32, #tpu.memory_space<vmem>>, vector<8x16xf32>
    tpu.vector_store %arg12[%c0_45, %c0_46], %125 {strides = array<i32>} : memref<8x16xf32, #tpu.memory_space<vmem>>, vector<8x16xf32>,
    %c0_47 = arith.constant 0 : index
    %c0_48 = arith.constant 0 : index
    %136 = vector.load %arg13[%c0_47, %c0_48] : memref<8x16xf32, #tpu.memory_space<vmem>>, vector<8x16xf32>
    tpu.vector_store %arg13[%c0_47, %c0_48], %131 {strides = array<i32>} : memref<8x16xf32, #tpu.memory_space<vmem>>, vector<8x16xf32>,
    return
  }
  func.func @transform_0(%arg0: i32) -> (i32, i32) {
    %c0_i32 = arith.constant 0 : i32
    %c0_i32_0 = arith.constant 0 : i32
    return %arg0, %c0_i32 : i32, i32
  }
  func.func @transform_1(%arg0: i32) -> (i32, i32) {
    %c0_i32 = arith.constant 0 : i32
    %c0_i32_0 = arith.constant 0 : i32
    %c0_i32_1 = arith.constant 0 : i32
    return %c0_i32, %c0_i32_0 : i32, i32
  }
  func.func @transform_2(%arg0: i32) -> (i32, i32) {
    %c0_i32 = arith.constant 0 : i32
    %c0_i32_0 = arith.constant 0 : i32
    %c0_i32_1 = arith.constant 0 : i32
    return %c0_i32, %c0_i32_0 : i32, i32
  }
  func.func @transform_3(%arg0: i32) -> (i32, i32) {
    %c0_i32 = arith.constant 0 : i32
    %c0_i32_0 = arith.constant 0 : i32
    %c0_i32_1 = arith.constant 0 : i32
    return %c0_i32, %c0_i32_0 : i32, i32
  }
  func.func @transform_4(%arg0: i32) -> (i32, i32) {
    %c0_i32 = arith.constant 0 : i32
    %c0_i32_0 = arith.constant 0 : i32
    %c0_i32_1 = arith.constant 0 : i32
    return %c0_i32, %c0_i32_0 : i32, i32
  }
  func.func @transform_5(%arg0: i32) -> (i32, i32) {
    %c0_i32 = arith.constant 0 : i32
    %c0_i32_0 = arith.constant 0 : i32
    %c0_i32_1 = arith.constant 0 : i32
    return %c0_i32, %c0_i32_0 : i32, i32
  }
  func.func @transform_6(%arg0: i32) -> (i32, i32) {
    %c0_i32 = arith.constant 0 : i32
    %c0_i32_0 = arith.constant 0 : i32
    %c0_i32_1 = arith.constant 0 : i32
    return %c0_i32, %c0_i32_0 : i32, i32
  }
  func.func @transform_7(%arg0: i32) -> (i32, i32) {
    %c0_i32 = arith.constant 0 : i32
    %c0_i32_0 = arith.constant 0 : i32
    %c0_i32_1 = arith.constant 0 : i32
    return %c0_i32, %c0_i32_0 : i32, i32
  }
  func.func @transform_8(%arg0: i32) -> (i32, i32) {
    %c0_i32 = arith.constant 0 : i32
    %c0_i32_0 = arith.constant 0 : i32
    return %arg0, %c0_i32 : i32, i32
  }
  func.func @transform_9(%arg0: i32) -> (i32, i32) {
    %c0_i32 = arith.constant 0 : i32
    %c0_i32_0 = arith.constant 0 : i32
    return %arg0, %c0_i32 : i32, i32
  }
  func.func @transform_10(%arg0: i32) -> (i32, i32) {
    %c0_i32 = arith.constant 0 : i32
    %c0_i32_0 = arith.constant 0 : i32
    %c0_i32_1 = arith.constant 0 : i32
    return %c0_i32, %c0_i32_0 : i32, i32
  }
}

</mosaic_0001>

<bundles_post_ra>
// kernel: tpu_custom_call.1
= control target key start
LH: loop header
LB: loop body
LE: loop exit
PB: predicated region body
PF: predicated region fallthrough
CT: control target
= control target key end

     0   :  { %16 = vsyncpa [#allocation5], 0  ;;  %s856_s13 = smov 0   ;;  %s954_s0 = inlined_call_operand.vmem [shape: f32[64,30], index: 0, kind: input, shape index: {}]   ;;  %s955_s1 = inlined_call_operand.vmem [shape: f32[30,64], index: 1, kind: input, shape index: {}]   ;;  %s956_s2 = inlined_call_operand.vmem [shape: f32[1,64], index: 2, kind: input, shape index: {}]   ;;  %s957_s3 = inlined_call_operand.vmem [shape: f32[1,64], index: 3, kind: input, shape index: {}]   ;;  %s958_s4 = inlined_call_operand.vmem [shape: f32[1,16], index: 4, kind: input, shape index: {}]   ;;  %s959_s5 = inlined_call_operand.vmem [shape: f32[8,64], index: 5, kind: input, shape index: {}]   ;;  %s960_s6 = inlined_call_operand.vmem [shape: f32[8,16], index: 6, kind: input, shape index: {}]   ;;  %s961_s7 = inlined_call_operand.vmem [shape: f32[8,16], index: 7, kind: input, shape index: {}]   ;;  %s962_s8 = inlined_call_operand.vmem [shape: f32[64,16], index: 8, kind: output, shape index: {0}]   ;;  %s963_s9 = inlined_call_operand.vmem [shape: f32[64,16], index: 9, kind: output, shape index: {1}]   ;;  %s964_s10 = inlined_call_operand.hbm [shape: f32[8,64], index: 10, kind: output, shape index: {2}]  }
   0x1 LB: > { %s862_s14 = sadd.s32 4294967295, %s794_s13   ;;  %p697_p0 = scmp.ge.s32.totalorder %s794_s13, 1  ;;  %s794_s13 = sphi %s856_s13, %s22_s13  }
   0x2   : > { %p314_p1 = scmp.lt.s32.totalorder %s794_s13, 3 }
   0x4   : > { %p315_p2 = pnand %p697_p0, %p314_p1 }
   0x5   : > { %s698_s15 = sshll.u32 (!%p315_p2), %s862_s14, 2  ;;  %p704_p4 = scmp.ne.s32.totalorder (!%p315_p2), %s862_s14, 0 }
   0x6   : > { %318 = sbr.rel (%p315_p2) target bundleno = 325 (0x145), region = 52  ;;  %p358_p3 = scmp.lt.s32.totalorder (!%p315_p2), %s698_s15, 7 }
   0xb   : > { %s966_s15 = smov (!%p358_p3, %s698_s15), 7  ;;  %378 = sbr.rel (%p704_p4) target bundleno = 20 (0x14), region = 56 }
   0xc   : > { %s699_s16 = sshll.u32 %s966_s15, 3 }
   0xd   : > { %s870_s19 = scalar_lea.vmem %s954_s0, %s699_s16  ;;  %s875_s22 = scalar_lea.vmem %s962_s8, %s699_s16 }
   0xe   : > { %s880_s25 = scalar_lea.vmem %s963_s9, %s699_s16 }
  0x10   : > { %v379_v0 = vld [vmem:[%s959_s5] sm:$0xff]  ;;  %vm380_vm0 = vcmask 523264   ;;  %vm383_vm1 = vcmask 130048  }
  0x11   : > { %v382_v1 = vld [vmem:[%s960_s6] sm:$0xff]  ;;  %381 = vst.msk [vmem:[#allocation4] sm:$0xff] %vm380_vm0, %v379_v0 }
  0x12   : > { %v385_v2 = vld [vmem:[%s961_s7] sm:$0xff]  ;;  %384 = vst.msk [vmem:[#allocation2] sm:$0xff] %vm383_vm1, %v382_v1 }
  0x13   : > { %386 = vst.msk [vmem:[#allocation3] sm:$0xff] %vm383_vm1, %v385_v2 }
  0x14 PF: > { %v394_v3 = vld [vmem:[%s955_s1 + $0x18] sm:$0x3f]  ;;  %vm412_vm2 = vcmask 1045504   ;;  %v393_v4 = vld [vmem:[%s955_s1 + $0x10] sm:$0xff]  ;;  %v392_v5 = vld [vmem:[%s955_s1 + $0x8] sm:$0xff]  ;;  %vm399_vm3 = vcmask 244736  }
  0x15   : > { %705 = vmatpush.msk.msra.mxu0 %vm412_vm2, %v394_v3  ;;  %723 = vmatpush.msk.msra.mxu2 %vm412_vm2, %v394_v3  ;;  %v391_v6 = vld [vmem:[%s955_s1] sm:$0xff]  ;;  %v389_v8 = vld [vmem:[%s870_s19 + $0x10] sm:$0xff]  ;;  %v388_v9 = vld [vmem:[%s870_s19 + $0x8] sm:$0xff]  ;;  %s797_s11 = smov 112   ;;  %s798_s12 = smov 96   ;;  %vm573_vm4 = vcmask 523264  }
  0x16   : > { %722 = vmatpush.msk.msra.mxu1 %vm412_vm2, %v394_v3  ;;  %724 = vmatpush.msk.msra.mxu3 %vm412_vm2, %v394_v3  ;;  %v387_v7 = vld [vmem:[%s870_s19] sm:$0xff]  ;;  %v390_v10 = vld [vmem:[%s870_s19 + $0x18] sm:$0xff]  ;;  %s796_s19 = smov 80   ;;  %p738_p5 = scmp.eq.s32.totalorder %s862_s14, 1  ;;  %vm489_vm5 = vcmask 130048  }
  0x17   : > { %429 = vmatpush.msra.mxu0 %v393_v4  ;;  %726 = vmatpush.msra.mxu2 %v393_v4  ;;  %v445_v11 = vld [vmem:[%s957_s3] sm:$0x1]  ;;  %s799_s15 = smov [#allocation4]   ;;  %s603_s20 = sshll.u32 %s964_s10, 4  ;;  %s604_s20 = int_to_ptr.hbm [resolvable:$true] %s603_s20 }
  0x18   : > { %725 = vmatpush.msra.mxu1 %v393_v4  ;;  %727 = vmatpush.msra.mxu3 %v393_v4  ;;  %v446_v12 = vsub.f32 1.0, %v445_v11  ;;  %v753_v13 = vld [vmem:[%s956_s2] ss:$0 sm:$0xff]  ;;  %v449_v15 = vld [vmem:[#allocation4] sm:$0xff]  ;;  %s601_s16 = sshll.u32 %s799_s15, 4  ;;  %v800_v4 = vmov 0.0   ;;  %s602_s16 = int_to_ptr.vmem [resolvable:$true] %s601_s16 }
  0x19   : > { %430 = vmatpush.msra.mxu0 %v392_v5  ;;  %729 = vmatpush.msra.mxu2 %v392_v5  ;;  %v754_v14 = vld [vmem:[%s957_s3] ss:$0 sm:$0xff] }
  0x1a   : > { %728 = vmatpush.msra.mxu1 %v392_v5  ;;  %730 = vmatpush.msra.mxu3 %v392_v5  ;;  %v457_v16 = vperm.slane %v446_v12, 0  ;;  %v455_v19 = vmul.f32 %v754_v14, %v449_v15  ;;  %v447_v40 = vld [vmem:[%s958_s4] sm:$0x1]  ;;  %v451_v50 = vld [vmem:[#allocation3] sm:$0xff] }
  0x1b   : > { %431 = vmatpush.msra.mxu0 %v391_v6  ;;  %732 = vmatpush.msra.mxu2 %v391_v6  ;;  %v448_v41 = vsub.f32 1.0, %v447_v40  ;;  %v755_v43 = vld [vmem:[%s958_s4] ss:$0 sm:$0xff]  ;;  %v483_v54 = vmul.f32 0.5, %v451_v50 }
  0x1c   : > { %706 = vmatmul.msk.f32.vlgmr.msra.gmra.mxu0 %vm399_vm3, %v387_v7  ;;  %708 = vmatmul.msk.f32.vlgmr.msra.gmra.mxu2 %vm399_vm3, %v389_v8  ;;  %v450_v44 = vld [vmem:[#allocation2] sm:$0xff] }
  0x1d   : > { %731 = vmatpush.msra.mxu1 %v391_v6  ;;  %733 = vmatpush.msra.mxu3 %v391_v6  ;;  %v479_v47 = vperm.slane %v448_v41, 0  ;;  %v477_v51 = vmul.f32 %v755_v43, %v450_v44 }
  0x1e   : > { %707 = vmatmul.msk.f32.vlgmr.msra.gmra.mxu1 %vm399_vm3, %v388_v9  ;;  %709 = vmatmul.msk.f32.vlgmr.msra.gmra.mxu3 %vm399_vm3, %v390_v10 }
  0x99   : > { %v433_v17 = vpop.f32.mrf.mxu0 }
  0x9a   : > { %v434_v18 = vadd.f32 %v753_v13, %v433_v17 }
  0x9b   : > { %v436_v20 = vpop.f32.mrf.mxu1 }
  0x9c   : > { %v459_v21 = vmul.f32 %v457_v16, %v434_v18  ;;  %v437_v22 = vadd.f32 %v753_v13, %v436_v20 }
  0x9e   : > { %v460_v23 = vadd.f32 %v459_v21, %v455_v19  ;;  %v493_v24 = vmul.f32 %v457_v16, %v437_v22 }
  0x9f   : > { %v439_v25 = vpop.f32.mrf.mxu2 }
  0xa0   : > { %v492_v26 = vmul.f32 %v754_v14, %v460_v23  ;;  %470 = vrot.lane.b32.xlu1 %v460_v23, %s796_s19  ;;  %462 = vrot.lane.b32.xlu0 %v460_v23, %s797_s11  ;;  %v440_v27 = vadd.f32 %v753_v13, %v439_v25 }
  0xa1   : > { %v442_v28 = vpop.f32.mrf.mxu3 }
  0xa2   : > { %v494_v29 = vadd.f32 %v493_v24, %v492_v26  ;;  %v520_v30 = vmul.f32 %v457_v16, %v440_v27  ;;  %v443_v31 = vadd.f32 %v753_v13, %v442_v28 }
  0xa4   : > { %v519_v32 = vmul.f32 %v754_v14, %v494_v29  ;;  %500 = vrot.lane.b32.xlu2 %v494_v29, %s798_s12  ;;  %v547_v34 = vmul.f32 %v457_v16, %v443_v31 }
  0xa6   : > { %v521_v33 = vadd.f32 %v520_v30, %v519_v32 }
  0xa8   : > { %v546_v35 = vmul.f32 %v754_v14, %v521_v33  ;;  %466 = vrot.lane.b32.xlu0 %v460_v23, %s798_s12  ;;  %496 = vrot.lane.b32.xlu1 %v494_v29, %s797_s11 }
  0xaa   : > { %v548_v36 = vadd.f32 %v547_v34, %v546_v35 }
  0xac   : > { %504 = vrot.lane.b32.xlu2 %v494_v29, %s796_s19  ;;  %574 = vst.msk [vmem:[#allocation4] sm:$0xff] %vm573_vm4, %v548_v36 }
  0xad   : > { %735 = dma.vmem_to_hbm [thread:$0]  (%p738_p5), %s602_s16, 128, %s604_s20, [#allocation5]  }
  0xb0   : > { %527 = vrot.lane.b32.xlu1 %v521_v33, %s798_s12  ;;  %523 = vrot.lane.b32.xlu0 %v521_v33, %s797_s11 }
  0xb4   : > { %531 = vrot.lane.b32.xlu2 %v521_v33, %s796_s19 }
  0xb8   : > { %554 = vrot.lane.b32.xlu1 %v548_v36, %s798_s12  ;;  %550 = vrot.lane.b32.xlu0 %v548_v36, %s797_s11 }
  0xbc   : > { %558 = vrot.lane.b32.xlu2 %v548_v36, %s796_s19 }
  0xfe   : > { %v501_v39 = vpop.permute.xlu2 %500 }
 0x106   : > { %v505_v53 = vpop.permute.xlu2 %504 }
 0x10e   : > { %v532_v3 = vpop.permute.xlu2 %531 }
 0x112   : > { %v471_v37 = vpop.permute.xlu1 %470  ;;  %v463_v38 = vpop.permute.xlu0 %462 }
 0x113   : > { %v465_v42 = vadd.f32 %v463_v38, %v460_v23 }
 0x116   : > { %v559_v20 = vpop.permute.xlu2 %558 }
 0x11a   : > { %v467_v45 = vpop.permute.xlu0 %466  ;;  %v497_v46 = vpop.permute.xlu1 %496 }
 0x11b   : > { %v469_v48 = vadd.f32 %v467_v45, %v465_v42  ;;  %v499_v49 = vadd.f32 %v497_v46, %v494_v29 }
 0x11d   : > { %v473_v52 = vadd.f32 %v471_v37, %v469_v48  ;;  %v503_v56 = vadd.f32 %v501_v39, %v499_v49 }
 0x11f   : > { %v481_v55 = vmul.f32 %v479_v47, %v473_v52  ;;  %v507_v60 = vadd.f32 %v505_v53, %v503_v56 }
 0x121   : > { %v482_v57 = vadd.f32 %v481_v55, %v477_v51  ;;  %v509_v1 = vmul.f32 %v507_v60, %v479_v47 }
 0x122   : > { %v524_v58 = vpop.permute.xlu0 %523  ;;  %v528_v62 = vpop.permute.xlu1 %527 }
 0x123   : > { %v484_v59 = vsub.f32 %v482_v57, %v483_v54  ;;  %v526_v61 = vadd.f32 %v524_v58, %v521_v33 }
 0x125   : > { %v710_v63 = vadd.f32 -0.5, %v484_v59  ;;  %490 = vst.msk [vmem:[%s875_s22] sm:$0xff] %vm489_vm5, %v484_v59  ;;  %v508_v0 = vmul.f32 %v755_v43, %v484_v59  ;;  %v530_v2 = vadd.f32 %v528_v62, %v526_v61 }
 0x127   : > { %vm486_vm6 = vcmp.gt.f32.partialorder %v710_v63, 0.0  ;;  %v510_v7 = vadd.f32 %v509_v1, %v508_v0  ;;  %v534_v10 = vadd.f32 %v532_v3, %v530_v2 }
 0x128   : > { %v711_v5 = vsel %vm486_vm6, 1.0, %v800_v4 }
 0x129   : > { %491 = vst.msk [vmem:[%s880_s25] sm:$0xff] %vm489_vm5, %v711_v5  ;;  %v511_v6 = vmul.f32 0.5, %v711_v5  ;;  %v536_v15 = vmul.f32 %v534_v10, %v479_v47 }
 0x12a   : > { %v551_v8 = vpop.permute.xlu0 %550  ;;  %v555_v14 = vpop.permute.xlu1 %554 }
 0x12b   : > { %v512_v9 = vsub.f32 %v510_v7, %v511_v6  ;;  %v553_v11 = vadd.f32 %v551_v8, %v548_v36 }
 0x12d   : > { %517 = vst.msk [vmem:[%s875_s22 + $0x8] sm:$0xff] %vm489_vm5, %v512_v9  ;;  %v712_v12 = vadd.f32 -0.5, %v512_v9  ;;  %v535_v13 = vmul.f32 %v755_v43, %v512_v9  ;;  %v557_v16 = vadd.f32 %v555_v14, %v553_v11 }
 0x12f   : > { %vm514_vm7 = vcmp.gt.f32.partialorder %v712_v12, 0.0  ;;  %v537_v19 = vadd.f32 %v536_v15, %v535_v13  ;;  %v561_v22 = vadd.f32 %v559_v20, %v557_v16 }
 0x130   : > { %v713_v17 = vsel %vm514_vm7, 1.0, %v800_v4 }
 0x131   : > { %518 = vst.msk [vmem:[%s880_s25 + $0x8] sm:$0xff] %vm489_vm5, %v713_v17  ;;  %v538_v18 = vmul.f32 0.5, %v713_v17  ;;  %v563_v25 = vmul.f32 %v561_v22, %v479_v47 }
 0x133   : > { %v539_v21 = vsub.f32 %v537_v19, %v538_v18 }
 0x135   : > { %544 = vst.msk [vmem:[%s875_s22 + $0x10] sm:$0xff] %vm489_vm5, %v539_v21  ;;  %v714_v23 = vadd.f32 -0.5, %v539_v21  ;;  %v562_v24 = vmul.f32 %v755_v43, %v539_v21 }
 0x137   : > { %vm541_vm8 = vcmp.gt.f32.partialorder %v714_v23, 0.0  ;;  %v564_v28 = vadd.f32 %v563_v25, %v562_v24 }
 0x138   : > { %v715_v26 = vsel %vm541_vm8, 1.0, %v800_v4 }
 0x139   : > { %545 = vst.msk [vmem:[%s880_s25 + $0x10] sm:$0xff] %vm489_vm5, %v715_v26  ;;  %v565_v27 = vmul.f32 0.5, %v715_v26 }
 0x13b   : > { %v566_v29 = vsub.f32 %v564_v28, %v565_v27 }
 0x13d   : > { %v716_v30 = vadd.f32 -0.5, %v566_v29  ;;  %571 = vst.msk [vmem:[%s875_s22 + $0x18] sm:$0xff] %vm489_vm5, %v566_v29 }
 0x13e   : > { %575 = vst.msk [vmem:[#allocation2] sm:$0xff] %vm489_vm5, %v566_v29 }
 0x13f   : > { %vm568_vm9 = vcmp.gt.f32.partialorder %v716_v30, 0.0 }
 0x140   : > { %v717_v31 = vsel %vm568_vm9, 1.0, %v800_v4 }
 0x141   : > { %572 = vst.msk [vmem:[%s880_s25 + $0x18] sm:$0xff] %vm489_vm5, %v717_v31 }
 0x142   : > { %576 = vst.msk [vmem:[#allocation3] sm:$0xff] %vm489_vm5, %v717_v31 }
 0x143   : > { %789 = dma.done.wait (%p738_p5), [#allocation5], 128  }
 0x144   : > { %791 = vsyncadd (%p738_p5), [#allocation5], 4294967168 }
 0x145 PF: > { %s22_s13 = sadd.s32 1, %s794_s13  }
 0x146   : > { %p19_p6 = scmp.ge.s32.totalorder %s22_s13, 4  }
 0x148   :  { %21 = sbr.rel (!%p19_p6) target bundleno = 1 (0x1), region = 107 }
 0x14d   :  { %633 = vsyncpa [#allocation5], 1 }
 0x14e   :  { %635 = vsyncpa [#allocation5 + $0x1], 1 }

</bundles_post_ra>
